<compile_context>
chip_gen: v7x
topology: tpu7x:2x2x1
jax: 0.10.0
libtpu: 0.0.40
codegen_flags: <defaults>
</compile_context>

<pallas_src>
import functools

import jax
import jax.numpy as jnp
from jax.experimental import pallas as pl
from jax.experimental.pallas import tpu as pltpu


def _cdiv(a, b):
    return (a + b - 1) // b


def _round_up(v, m):
    return _cdiv(v, m) * m


def _vmem_budget():
    """(scoped vmem limit to request, budget for tile working set)."""
    try:
        cap = int(pltpu.get_tpu_info().vmem_capacity_bytes)
    except Exception:
        cap = 64 * 1024 * 1024                      # conservative (v7x-sized) fallback
    limit = min((cap * 3) // 4, 96 * 1024 * 1024)   # 96 MiB on v5e/v6e, 48 MiB on v7x
    budget = limit - 4 * 1024 * 1024                # headroom for Mosaic internals
    return limit, budget


# ---------------------------------------------------------------------------
# Single-pass kernel: full batch resident per feature tile (small/medium B).
# ---------------------------------------------------------------------------
def _dice_single_pass_kernel(x_ref, alpha_ref, o_ref, *, epsilon, inv_b, tile_f):
    j = pl.program_id(0)
    x = x_ref[...]                                            # (B, TF) native dtype
    x32 = x.astype(jnp.float32)

    # Two-sweep batch statistics inside the resident tile: biased variance,
    # no E[x^2]-E[x]^2 cancellation.
    mean = jnp.sum(x32, axis=0, keepdims=True) * inv_b        # (1, TF)
    centered = x32 - mean
    var = jnp.sum(centered * centered, axis=0, keepdims=True) * inv_b
    x_hat = centered * jax.lax.rsqrt(var + epsilon)           # gamma=1, beta=0

    # Exact sigmoid (mem-bound kernel: exact division costs nothing wall-clock).
    p = 1.0 / (1.0 + jnp.exp(-x_hat))

    # alpha is resident (fetched once for the whole grid); slice this tile out.
    start = j * tile_f
    if tile_f % 128 == 0:
        start = pl.multiple_of(start, 128)
    alpha = alpha_ref[:, pl.ds(start, tile_f)].astype(jnp.float32)   # (1, TF)
    gate = alpha + p * (1.0 - alpha)                          # == p + (1-p)*alpha

    # Final multiply against native-dtype x keeps the f32 working set small for
    # bf16/fp16 inputs (identical result for f32).
    o_ref[...] = (x * gate.astype(x.dtype)).astype(o_ref.dtype)


def _pick_tile_f(b, f, dtype_bytes, budget):
    """Largest lane-dense feature tile whose full-batch column fits the budget."""
    # Per feature column: double-buffered in + out tiles (native dtype) plus
    # ~3 f32 temporaries (x32 / centered / p).
    per_col = b * (4 * dtype_bytes + 3 * 4)
    tile_cap = _round_up(f, 128)
    for cand in (4096, 2048, 1024, 512, 256, 128):
        cand = min(cand, tile_cap)
        if cand * per_col <= budget:
            return cand
    return None   # full-batch column does not fit even at 128 -> two-pass path


# ---------------------------------------------------------------------------
# Two-pass (batch-tiled) path for large batches / v7x's smaller VMEM.
#   pass 1: shifted sums  -> shift, s1 = sum(x-shift), s2 = sum((x-shift)^2)
#   pass 2: normalize + Dice gate
# ---------------------------------------------------------------------------
def _dice_stats_kernel(x_ref, shift_ref, s1_ref, s2_ref, *, batch, batch_tile):
    i = pl.program_id(1)                                      # batch-tile step
    x32 = x_ref[...].astype(jnp.float32)                      # (TB, TF)
    rows = jax.lax.broadcasted_iota(jnp.int32, x32.shape, 0) + i * batch_tile
    mask = rows < batch                                       # ragged batch edge
    x32 = jnp.where(mask, x32, 0.0)

    @pl.when(i == 0)
    def _():
        # Shift = mean of the first batch tile; removes the bulk offset so the
        # final E[(x-s)^2] - E[x-s]^2 combination is cancellation-free.
        inv_n0 = 1.0 / float(min(batch_tile, batch))
        shift_ref[...] = jnp.sum(x32, axis=0, keepdims=True) * inv_n0
        s1_ref[...] = jnp.zeros_like(s1_ref)
        s2_ref[...] = jnp.zeros_like(s2_ref)

    centered = jnp.where(mask, x32 - shift_ref[...], 0.0)
    s1_ref[...] += jnp.sum(centered, axis=0, keepdims=True)
    s2_ref[...] += jnp.sum(centered * centered, axis=0, keepdims=True)


def _dice_apply_kernel(x_ref, shift_ref, s1_ref, s2_ref, alpha_ref, o_ref, *,
                       epsilon, inv_b):
    x = x_ref[...]                                            # (TB, TF)
    x32 = x.astype(jnp.float32)
    mean_c = s1_ref[...] * inv_b                              # E[x - shift]
    var = jnp.maximum(s2_ref[...] * inv_b - mean_c * mean_c, 0.0)
    mean = shift_ref[...] + mean_c
    x_hat = (x32 - mean) * jax.lax.rsqrt(var + epsilon)
    p = 1.0 / (1.0 + jnp.exp(-x_hat))
    alpha = alpha_ref[...].astype(jnp.float32)
    gate = alpha + p * (1.0 - alpha)
    o_ref[...] = (x * gate.astype(x.dtype)).astype(o_ref.dtype)


def _dice_two_pass(x, alpha2d, epsilon, limit, budget, batch_tile):
    b, f = x.shape
    dtype_bytes = jnp.dtype(x.dtype).itemsize

    tile_f = min(512, _round_up(f, 128))
    if _cdiv(f, tile_f) == 1:
        tile_f = f                       # single full-extent feature tile
    if batch_tile is None:
        per_row = tile_f * (4 * dtype_bytes + 3 * 4)
        batch_tile = 8
        for cand in (2048, 1024, 512, 256, 128, 64, 32, 16, 8):
            if cand * per_row <= budget:
                batch_tile = cand
                break
    if _cdiv(b, batch_tile) == 1:
        batch_tile = b                   # single full-extent batch tile
    assert batch_tile == b or batch_tile % 8 == 0

    n_f = _cdiv(f, tile_f)
    n_b = _cdiv(b, batch_tile)

    x_spec = pl.BlockSpec((batch_tile, tile_f), lambda j, i: (i, j))
    stats_spec = pl.BlockSpec((1, tile_f), lambda j, i: (0, j))
    stats_shape = jax.ShapeDtypeStruct((1, f), jnp.float32)

    # Pass 1: per-feature shifted sums, accumulated over the batch ("arbitrary")
    # grid axis into stats blocks that stay resident across it.
    shift, s1, s2 = pl.pallas_call(
        functools.partial(_dice_stats_kernel, batch=b, batch_tile=batch_tile),
        out_shape=(stats_shape, stats_shape, stats_shape),
        grid_spec=pl.GridSpec(
            grid=(n_f, n_b),
            in_specs=[x_spec],
            out_specs=(stats_spec, stats_spec, stats_spec),
        ),
        compiler_params=pltpu.CompilerParams(
            dimension_semantics=("parallel", "arbitrary"),
            vmem_limit_bytes=limit,
        ),
    )(x)

    # Pass 2: normalization + Dice gate, both grid axes independent.
    return pl.pallas_call(
        functools.partial(_dice_apply_kernel, epsilon=float(epsilon), inv_b=1.0 / b),
        out_shape=jax.ShapeDtypeStruct((b, f), x.dtype),
        grid_spec=pl.GridSpec(
            grid=(n_f, n_b),
            in_specs=[x_spec, stats_spec, stats_spec, stats_spec, stats_spec],
            out_specs=x_spec,
        ),
        compiler_params=pltpu.CompilerParams(
            dimension_semantics=("parallel", "parallel"),
            vmem_limit_bytes=limit,
        ),
    )(x, shift, s1, s2, alpha2d)


# ---------------------------------------------------------------------------
# Public entry point.
# ---------------------------------------------------------------------------
def dice_forward(x, alpha, epsilon=1e-9, *, force_two_pass=False, batch_tile=None):
    """Dice forward. x: (batch, features); alpha: (features,) parameter.

    epsilon defaults to 1e-9 to match gbiz_torch's Dice(BatchNorm1d(eps=1e-09)).
    """
    assert x.ndim == 2 and alpha.shape == (x.shape[1],)
    b, f = x.shape
    dtype_bytes = jnp.dtype(x.dtype).itemsize
    limit, budget = _vmem_budget()
    alpha2d = alpha.reshape(1, f)

    tile_f = _pick_tile_f(b, f, dtype_bytes, budget)
    # Two-pass when the full-batch column doesn't fit VMEM, or when it would be
    # forced down to 128-wide tiles (poor HBM efficiency) by a very large batch.
    if force_two_pass or tile_f is None or (tile_f == 128 and b >= 2048):
        return _dice_two_pass(x, alpha2d, epsilon, limit, budget, batch_tile)

    n_f = _cdiv(f, tile_f)
    # Guarantee >=2 feature tiles so dimension_semantics=("parallel",) can
    # shard across the two TensorCores on v7x (harmless on single-TC v5e/v6e).
    if n_f < 2 and f > 128:
        tile_f = _round_up(_cdiv(f, 2), 128)
        n_f = _cdiv(f, tile_f)
    if n_f == 1:
        tile_f = f                        # single full-extent tile (small F)

    # x is NOT padded and the output is NOT sliced: grid = cdiv(F, tile_f) and
    # the ragged last feature tile is masked on writeback. Only alpha (tiny) is
    # padded so the resident in-kernel slice stays in bounds.
    f_res = n_f * tile_f
    if f_res != f:
        alpha2d = jnp.pad(alpha2d, ((0, 0), (0, f_res - f)))

    kernel = functools.partial(_dice_single_pass_kernel,
                               epsilon=float(epsilon), inv_b=1.0 / b, tile_f=tile_f)
    return pl.pallas_call(
        kernel,
        out_shape=jax.ShapeDtypeStruct((b, f), x.dtype),
        grid_spec=pl.GridSpec(
            grid=(n_f,),
            in_specs=[
                # NOTE: for tiny-batch shapes where per-step DMAs are short,
                # pipeline_mode=pl.Buffered(3) here (and on out_specs) hides the
                # fixed per-step cost; default depth is used for robustness.
                pl.BlockSpec((b, tile_f), lambda j: (0, j)),   # x tile, full batch
                pl.BlockSpec((1, f_res), lambda j: (0, 0)),    # alpha: resident, fetched once
            ],
            out_specs=pl.BlockSpec((b, tile_f), lambda j: (0, j)),
        ),
        compiler_params=pltpu.CompilerParams(
            dimension_semantics=("parallel",),
            vmem_limit_bytes=limit,
        ),
        cost_estimate=pl.CostEstimate(
            flops=10 * b * f,
            transcendentals=b * f,
            bytes_accessed=2 * b * f * dtype_bytes + 4 * f,
        ),
    )(x, alpha2d)


def dice_reference(x, alpha, epsilon=1e-9):
    """Pure-JAX reference matching PyTorch Dice.forward (training-mode BN)."""
    x32 = x.astype(jnp.float32)
    mean = jnp.mean(x32, axis=0, keepdims=True)
    var = jnp.mean((x32 - mean) ** 2, axis=0, keepdims=True)
    x_hat = (x32 - mean) / jnp.sqrt(var + epsilon)
    p = jax.nn.sigmoid(x_hat)
    return (p * x32 + (1.0 - p) * alpha[None, :] * x32).astype(x.dtype)


if __name__ == "__main__":
    key = jax.random.PRNGKey(0)
    k1, k2, k3, k4 = jax.random.split(key, 4)
    ATOL = RTOL = 1e-3   # kernel math is exact f32; margin for TPU exp/rsqrt rounding

    # Case 1: F multiple of 128 (multi-tile feature grid), alpha zero-init
    # (matches nn.init.zeros_(self.alpha)).
    b1, f1 = 16, 384
    x1 = jax.random.normal(k1, (b1, f1), dtype=jnp.float32)
    a1 = jnp.zeros((f1,), dtype=jnp.float32)
    o1 = jax.block_until_ready(dice_forward(x1, a1))
    r1 = dice_reference(x1, a1)
    assert o1.shape == x1.shape and o1.dtype == x1.dtype
    assert jnp.allclose(o1, r1, atol=ATOL, rtol=RTOL), "case 1 mismatch vs reference"

    # Case 2: F not 128-aligned (ragged edge tile handled in-kernel, no
    # wrapper pad/slice), nonzero alpha, offset data.
    b2, f2 = 8, 200
    x2 = 1.5 * jax.random.normal(k2, (b2, f2), dtype=jnp.float32) + 0.7
    a2 = 0.25 * jax.random.normal(k3, (f2,), dtype=jnp.float32)
    o2 = jax.block_until_ready(dice_forward(x2, a2))
    r2 = dice_reference(x2, a2)
    assert o2.shape == x2.shape and o2.dtype == x2.dtype
    assert jnp.allclose(o2, r2, atol=ATOL, rtol=RTOL), "case 2 mismatch vs reference"

    # Case 3: force the batch-tiled two-pass path (large-batch / v7x fallback)
    # with ragged batch edge (40 = 16+16+8) and mean-offset data.
    b3, f3 = 40, 200
    x3 = jax.random.normal(k4, (b3, f3), dtype=jnp.float32) + 2.0
    a3 = 0.1 * jnp.ones((f3,), dtype=jnp.float32)
    o3 = jax.block_until_ready(dice_forward(x3, a3, force_two_pass=True, batch_tile=16))
    r3 = dice_reference(x3, a3)
    assert o3.shape == x3.shape and o3.dtype == x3.dtype
    assert jnp.allclose(o3, r3, atol=ATOL, rtol=RTOL), "case 3 mismatch vs reference"

    print("KERNEL_OK")
</pallas_src>

<mosaic_0001>
module attributes {stable_mosaic.version = 11 : i64} {
  func.func @_dice_single_pass_kernel(%arg0: i32, %arg1: memref<16x256xf32, #tpu.memory_space<vmem>>, %arg2: memref<1x512xf32, #tpu.memory_space<vmem>>, %arg3: memref<16x256xf32, #tpu.memory_space<vmem>>) attributes {dimension_semantics = [#tpu.dimension_semantics<parallel>], iteration_bounds = array<i64: 2>, scalar_prefetch = 0 : i64, scratch_operands = 0 : i64, tpu.core_type = #tpu.core_type<tc>, window_params = [{transform_indices = @transform_0, window_bounds = array<i64: 16, 256>}, {pipeline_mode = #tpu.pipeline_mode<synchronous>, transform_indices = @transform_1, window_bounds = array<i64: 1, 512>}, {transform_indices = @transform_2, window_bounds = array<i64: 16, 256>}]} {
    %c0 = arith.constant 0 : index
    %c0_0 = arith.constant 0 : index
    %0 = vector.load %arg1[%c0, %c0_0] : memref<16x256xf32, #tpu.memory_space<vmem>>, vector<16x256xf32>
    %cst = arith.constant dense<0.000000e+00> : vector<256xf32>
    %1 = vector.multi_reduction <add>, %0, %cst [0] : vector<16x256xf32> to vector<256xf32>
    %2 = vector.shape_cast %1 : vector<256xf32> to vector<1x256xf32>
    %cst_1 = arith.constant 6.250000e-02 : f32
    %3 = vector.broadcast %cst_1 : f32 to vector<1x256xf32>
    %4 = arith.mulf %2, %3 : vector<1x256xf32>
    %5 = vector.broadcast %4 : vector<1x256xf32> to vector<16x256xf32>
    %6 = arith.subf %0, %5 : vector<16x256xf32>
    %7 = arith.mulf %6, %6 : vector<16x256xf32>
    %cst_2 = arith.constant dense<0.000000e+00> : vector<256xf32>
    %8 = vector.multi_reduction <add>, %7, %cst_2 [0] : vector<16x256xf32> to vector<256xf32>
    %9 = vector.shape_cast %8 : vector<256xf32> to vector<1x256xf32>
    %cst_3 = arith.constant 6.250000e-02 : f32
    %10 = vector.broadcast %cst_3 : f32 to vector<1x256xf32>
    %11 = arith.mulf %9, %10 : vector<1x256xf32>
    %cst_4 = arith.constant 9.99999971E-10 : f32
    %12 = vector.broadcast %cst_4 : f32 to vector<1x256xf32>
    %13 = arith.addf %11, %12 : vector<1x256xf32>
    %14 = math.rsqrt %13 : vector<1x256xf32>
    %15 = vector.broadcast %14 : vector<1x256xf32> to vector<16x256xf32>
    %16 = arith.mulf %6, %15 : vector<16x256xf32>
    %cst_5 = arith.constant 0.000000e+00 : f32
    %17 = vector.broadcast %cst_5 : f32 to vector<16x256xf32>
    %18 = arith.subf %17, %16 : vector<16x256xf32>
    %19 = math.exp %18 : vector<16x256xf32>
    %cst_6 = arith.constant 1.000000e+00 : f32
    %20 = vector.broadcast %cst_6 : f32 to vector<16x256xf32>
    %21 = arith.addf %20, %19 : vector<16x256xf32>
    %cst_7 = arith.constant 1.000000e+00 : f32
    %22 = vector.broadcast %cst_7 : f32 to vector<16x256xf32>
    %23 = arith.divf %22, %21 : vector<16x256xf32>
    %c256_i32 = arith.constant 256 : i32
    %24 = arith.muli %arg0, %c256_i32 : i32
    %25 = tpu.assume_multiple %24, 128 : i32
    %c0_8 = arith.constant 0 : index
    %26 = arith.index_cast %25 : i32 to index
    %27 = vector.load %arg2[%c0_8, %26] : memref<1x512xf32, #tpu.memory_space<vmem>>, vector<1x256xf32>
    %cst_9 = arith.constant 1.000000e+00 : f32
    %28 = vector.broadcast %cst_9 : f32 to vector<1x256xf32>
    %29 = arith.subf %28, %27 : vector<1x256xf32>
    %30 = vector.broadcast %29 : vector<1x256xf32> to vector<16x256xf32>
    %31 = arith.mulf %23, %30 : vector<16x256xf32>
    %32 = vector.broadcast %27 : vector<1x256xf32> to vector<16x256xf32>
    %33 = arith.addf %32, %31 : vector<16x256xf32>
    %34 = arith.mulf %0, %33 : vector<16x256xf32>
    %c0_10 = arith.constant 0 : index
    %c0_11 = arith.constant 0 : index
    %35 = vector.load %arg3[%c0_10, %c0_11] : memref<16x256xf32, #tpu.memory_space<vmem>>, vector<16x256xf32>
    tpu.vector_store %arg3[%c0_10, %c0_11], %34 {strides = array<i32>} : memref<16x256xf32, #tpu.memory_space<vmem>>, vector<16x256xf32>,
    return
  }
  func.func @transform_0(%arg0: i32) -> (i32, i32) {
    %c0_i32 = arith.constant 0 : i32
    %c0_i32_0 = arith.constant 0 : i32
    return %c0_i32, %arg0 : i32, i32
  }
  func.func @transform_1(%arg0: i32) -> (i32, i32) {
    %c0_i32 = arith.constant 0 : i32
    %c0_i32_0 = arith.constant 0 : i32
    %c0_i32_1 = arith.constant 0 : i32
    return %c0_i32, %c0_i32_0 : i32, i32
  }
  func.func @transform_2(%arg0: i32) -> (i32, i32) {
    %c0_i32 = arith.constant 0 : i32
    %c0_i32_0 = arith.constant 0 : i32
    return %c0_i32, %arg0 : i32, i32
  }
}

</mosaic_0001>

<bundles_post_ra>
// kernel: tpu_custom_call.1
= control target key start
LH: loop header
LB: loop body
LE: loop exit
PB: predicated region body
PF: predicated region fallthrough
CT: control target
= control target key end

     0   :  { %7 = vsyncpa [#allocation3], 0  ;;  %s926_s0 = inlined_call_operand.hbm [shape: f32[16,384], index: 0, kind: input, shape index: {}]   ;;  %s927_s1 = inlined_call_operand.hbm [shape: f32[1,512], index: 1, kind: input, shape index: {}]   ;;  %s928_s2 = inlined_call_operand.hbm [shape: f32[16,384], index: 2, kind: output, shape index: {}]  }
   0x1   :  { %9 = vsyncpa [#allocation3 + $0x1], 0 }
   0x2   :  { %10 = vsyncpa [#allocation6], 0 }
   0x3   :  { %11 = vsyncpa [#allocation4], 0 }
   0x4   :  { %13 = vsyncpa [#allocation4 + $0x1], 0  ;;  %s674_s9 = smov 0   ;;  %s676_s10 = smov 0  }
   0x5   :  { %s678_s11 = smov 0   ;;  %s680_s12 = smov 0  }
   0x6 LB: > { %s695_s13 = sadd.s32 4294967295, %s650_s12   ;;  %s417_s14 = sadd.s32 4294967294, %s650_s12   ;;  %s650_s12 = sphi %s680_s12, %s948_s12   ;;  %s646_s11 = sphi %s678_s11, %s947_s11   ;;  %s642_s10 = sphi %s676_s10, %s946_s10   ;;  %s638_s9 = sphi %s674_s9, %s945_s9  }
   0x7   : > { %s699_s15 = sadd.s32 1, %s650_s12   ;;  %s26_s16 = sadd.s32 1, %s646_s11 }
   0x8   : > { %s23_s17 = ssub.s32 %s650_s12, %s699_s15  ;;  %p33_p0 = scmp.ne.s32.totalorder %s646_s11, %s642_s10 }
   0x9   : > { %p24_p1 = scmp.eq.s32.totalorder %s23_s17, 0  ;;  %p34_p2 = scmp.eq.s32.totalorder %s650_s12, 0 }
   0xa   : > { %p39_p3 = scmp.ne.s32.totalorder %s642_s10, %s638_s9  ;;  %p929_p4 = scmp.eq.s32.totalorder %s695_s13, 0 }
   0xb   : > { %s711_s18 = scalar_select %p24_p1, %s646_s11, %s26_s16  }
   0xc   : > { %p713_p5 = por %p34_p2, %p33_p0  ;;  %p719_p6 = por %p929_p4, %p39_p3 }
   0xd   : > { %p84_p7 = scmp.eq.s32.totalorder %s695_s13, 1  ;;  %p90_p8 = scmp.eq.s32.totalorder %s417_s14, 1 }
   0xe   : > { %s932_s19 = scalar_select %p713_p5, 1, 0 }
   0xf   : > { %s933_s20 = scalar_select %p719_p6, 1, 0 }
  0x10   : > { %p418_p9 = scmp.ge.s32.totalorder %s650_s12, 1  ;;  %p97_p10 = scmp.lt.s32.totalorder %s650_s12, 3 }
  0x11   : > { %p726_p11 = por %p84_p7, %p33_p0  ;;  %p730_p12 = por %p90_p8, %p39_p3 }
  0x12   : > { %p734_p13 = pnand %p418_p9, %p97_p10  ;;  %s652_s24 = smov [#allocation5]  }
  0x13   : > { %s934_s21 = scalar_select %p726_p11, 1, 0 }
  0x14   : > { %s935_s22 = scalar_select %p730_p12, 1, 0 }
  0x15   : > { %s936_s23 = scalar_select %p734_p13, 1, 0 }
  0x16   : > { %p456_p1 = pneg %p734_p13  ;;  %s110_s25 = sshll.u32 %s652_s24, 4  ;;  %s111_s25 = int_to_ptr.vmem [resolvable:$true] %s110_s25 }
  0x17   : > { %s524_s29 = scalar_lea.hbm %s927_s1, 64 }
  0x18   : > { %p742_p2 = pnand %p456_p1, %p929_p4  ;;  %p525_p0 = scmp.ne.s32.totalorder %s927_s1, %s524_s29 }
  0x19   : > { %p531_p9 = scmp.lt.u32.totalorder %s524_s29, %s927_s1 }
  0x1a   : > { %p526_p3 = pneg %p742_p2 }
  0x1c   : > { %p527_p7 = pnand %p526_p3, %p525_p0 }
  0x1e   : > { %p528_p8 = pneg %p527_p7 }
  0x20   : > { %p533_p10 = pnand %p531_p9, %p528_p8 }
  0x22   : > { %536 = shalt.err (!%p533_p10)
}
  0x23   : > { %s537_s6 = scalar_lea.vmem %s111_s25, 64  ;;  %p545_p11 = scmp.lt.s32.totalorder %s111_s25, %s111_s25 }
  0x24   : > { %p538_p1 = scmp.ne.s32.totalorder %s111_s25, %s537_s6  ;;  %p546_p6 = scmp.lt.s32.totalorder %s537_s6, %s537_s6 }
  0x26   : > { %p540_p4 = pnand %p538_p1, %p526_p3  ;;  %p547_p13 = por %p546_p6, %p545_p11 }
  0x28   : > { %p541_p12 = pneg %p540_p4 }
  0x2a   : > { %p548_p5 = pnand %p547_p13, %p541_p12 }
  0x2c   : > { %551 = shalt.err (!%p548_p5)
}
  0x2d   : > { %459 = dma.hbm_to_vmem [thread:$0]  (!%p742_p2), %s927_s1, 64, %s111_s25, [#allocation6]  }
  0x2e   : > { %p420_p0 = scmp.ge.s32.totalorder %s650_s12, 2 }
  0x2f   : > { %p938_p7 = scmp.ne.s32.totalorder (!%p420_p0), %s932_s19, 0 }
  0x30   : > { %117 = sbr.rel (%p420_p0) target bundleno = 90 (0x5a), region = 20 }
  0x37   : > { %120 = sbr.rel (!%p938_p7) target bundleno = 90 (0x5a), region = 24  ;;  %s121_s14 = sand.u32 (%p938_p7), 1, %s646_s11  }
  0x38   : > { %s422_s16 = sshll.u32 (%p938_p7), %s650_s12, 1  ;;  %s421_s17 = sshll.u32 (%p938_p7), %s121_s14, 5 }
  0x39   : > { %s127_s24 = ssub.s32 (%p938_p7), 3, %s422_s16  ;;  %s775_s27 = scalar_lea.sflag (%p938_p7), [#allocation3], %s121_s14 }
  0x3a   : > { %p128_p4 = scmp.lt.s32.totalorder (%p938_p7), %s127_s24, 2  ;;  %s125_s28 = scalar_lea.vmem (%p938_p7), [#allocation2], %s421_s17 }
  0x3e   : > { %s950_s24 = smov (!%p128_p4, %s127_s24), 2 }
  0x3f   : > { %s772_s26 = sshll.u32 %s950_s24, 8 }
  0x40   : > { %s132_s25 = ssub.s32 512, %s772_s26 }
  0x41   : > { %133 = vsyncadd %s775_s27, %s132_s25  ;;  %p424_p5 = scmp.ne.s32.totalorder %s772_s26, 0  ;;  %s444_s19 = sshll.u32 %s650_s12, 8 }
  0x42   : > { %s783_s3 = scalar_lea.hbm %s926_s0, %s444_s19  ;;  %s426_s4 = sshll.u32 %s950_s24, 3 }
  0x43   : > { %s139_s5 = sshll.u32 %s125_s28, 4  ;;  %s552_s6 = scalar_lea.hbm %s783_s3, %s772_s26  ;;  %s786_s5 = int_to_ptr.vmem [resolvable:$true] %s139_s5 }
  0x44   : > { %p553_p6 = scmp.ne.s32.totalorder %s783_s3, %s552_s6  ;;  %s556_s14 = scalar_lea.hbm %s926_s0, 768 }
  0x45   : > { %p557_p13 = scmp.lt.u32.totalorder %s783_s3, %s926_s0  ;;  %p558_p2 = scmp.lt.u32.totalorder %s556_s14, %s552_s6 }
  0x46   : > { %p554_p11 = pnand %p553_p6, %p424_p5  ;;  %p560_p8 = scmp.lt.u32.totalorder %s552_s6, %s783_s3 }
  0x47   : > { %p559_p3 = por %p558_p2, %p557_p13 }
  0x48   : > { %p555_p12 = pneg %p554_p11 }
  0x49   : > { %p561_p9 = por %p560_p8, %p559_p3 }
  0x4b   : > { %p562_p10 = pnand %p561_p9, %p555_p12 }
  0x4d   : > { %565 = shalt.err (!%p562_p10)
}
  0x4e   : > { %s566_s25 = scalar_lea.vmem %s786_s5, %s772_s26  ;;  %s653_s28 = smov [#allocation2]  }
  0x4f   : > { %p567_p1 = scmp.ne.s32.totalorder %s786_s5, %s566_s25  ;;  %s570_s19 = sshll.u32 %s653_s28, 4  ;;  %s571_s19 = int_to_ptr.vmem [resolvable:$false] %s570_s19 }
  0x50   : > { %s572_s29 = scalar_lea.vmem %s571_s19, 1024  ;;  %p573_p6 = scmp.lt.s32.totalorder %s786_s5, %s571_s19 }
  0x51   : > { %p568_p7 = pnand %p567_p1, %p424_p5  ;;  %p574_p11 = scmp.lt.s32.totalorder %s572_s29, %s566_s25 }
  0x53   : > { %p569_p4 = pneg %p568_p7  ;;  %p575_p13 = por %p574_p11, %p573_p6 }
  0x55   : > { %p576_p2 = pnand %p575_p13, %p569_p4 }
  0x57   : > { %579 = shalt.err (!%p576_p2)
}
  0x58   : > { %s654_s30 = smov 384   ;;  %s655_s6 = smov 256  }
  0x59   : > { %145 = dma.hbm_to_vmem [thread:$0]  (%p424_p5), %s783_s3, %s772_s26, %s786_s5, %s775_s27, %s654_s30, %s655_s6, %s426_s4  }
  0x5a PF: > { %p939_p12 = scmp.ne.s32.totalorder %s936_s23, 0 }
  0x5b   : > { %s818_s7 = sand.u32 (!%p939_p12), 1, %s642_s10   ;;  %p940_p3 = scmp.ne.s32.totalorder (!%p939_p12), %s933_s20, 0 }
  0x5c   : > { %151 = sbr.rel (%p939_p12) target bundleno = 221 (0xdd), region = 28  ;;  %s430_s8 = sshll.u32 (!%p939_p12), %s818_s7, 5 }
  0x5d   : > { %s154_s14 = scalar_lea.sflag (!%p939_p12), [#allocation3], %s818_s7  ;;  %s157_s16 = scalar_lea.vmem (!%p939_p12), [#allocation2], %s430_s8 }
  0x63   : > { %625 = dma.done.wait (%p940_p3), %s154_s14, 512  }
  0x64   : > { %627 = vsyncadd (%p940_p3), %s154_s14, 4294966784  ;;  %p941_p5 = scmp.eq.s32.totalorder %s695_s13, 0 }
  0x66   : > { %629 = dma.done.wait (%p941_p5), [#allocation6], 64   ;;  %p942_p8 = pmov %p941_p5 }
  0x67   : > { %v832_v0 = vld [vmem:[%s157_s16] sm:$0xff]  ;;  %v834_v1 = vld [vmem:[%s157_s16 + $0x10] sm:$0xff]  ;;  %v838_v3 = vld [vmem:[%s157_s16 + $0x8] sm:$0xff]  ;;  %s433_s20 = sshll.u32 %s695_s13, 8  ;;  %v275_v60 = vlaneseq  ;;  %s181_s26 = scalar_lea.vmem [#allocation7], %s430_s8 }
  0x68   : > { %631 = vsyncadd (%p942_p8), [#allocation6], 4294967232  ;;  %v196_v2 = vadd.f32 %v834_v1, %v832_v0  ;;  %v840_v4 = vld [vmem:[%s157_s16 + $0x18] sm:$0xff]  ;;  %s269_s23 = sshra.s32 %s433_s20, 7  ;;  %s313_s27 = scalar_lea.sflag [#allocation4], %s818_s7 }
  0x69   : > { %v203_v5 = vadd.f32 %v840_v4, %v838_v3  ;;  %s271_s24 = scalar_lea.vmem [#allocation5], %s269_s23  ;;  %p943_p9 = scmp.ne.s32.totalorder %s934_s21, 0 }
  0x6a   : > { %v197_v6 = vrot.slane %v196_v2, 4  ;;  %s435_s3 = sshll.u32 (%p943_p9), %s695_s13, 1 }
  0x6b   : > { %v204_v7 = vrot.slane %v203_v5, 4  ;;  %s321_s4 = ssub.s32 (%p943_p9), 3, %s435_s3 }
  0x6c   : > { %v198_v8 = vadd.f32 %v197_v6, %v196_v2  ;;  %v276_v6 = vshrl.u32 %v275_v60, 7  ;;  %p322_p10 = scmp.lt.s32.totalorder (%p943_p9), %s321_s4, 2 }
  0x6d   : > { %v205_v9 = vadd.f32 %v204_v7, %v203_v5 }
  0x6e   : > { %v199_v10 = vrot.slane %v198_v8, 2 }
  0x6f   : > { %v206_v11 = vrot.slane %v205_v9, 2 }
  0x70   : > { %v200_v12 = vadd.f32 %v199_v10, %v198_v8  ;;  %v272_v8 = vld [vmem:[%s271_s24] sm:$0x3] }
  0x71   : > { %v207_v13 = vadd.f32 %v206_v11, %v205_v9  ;;  %v273_v11 = vsub.f32 1.0, %v272_v8 }
  0x72   : > { %v201_v14 = vrot.slane %v200_v12, 1 }
  0x73   : > { %v208_v15 = vrot.slane %v207_v13, 1 }
  0x74   : > { %v202_v16 = vadd.f32 %v201_v14, %v200_v12  ;;  %v277_v12 = vsub.s32 0, %v276_v6 }
  0x75   : > { %v209_v17 = vadd.f32 %v208_v15, %v207_v13  ;;  %v281_v13 = vsub.s32 1, %v276_v6 }
  0x76   : > { %v210_v18 = vmul.f32 0.0625, %v202_v16  ;;  %v278_v14 = vrot.slane %v273_v11, %v277_v12  ;;  %v293_v15 = vrot.slane %v272_v8, %v277_v12 }
  0x77   : > { %v211_v19 = vmul.f32 0.0625, %v209_v17  ;;  %v282_v16 = vrot.slane %v273_v11, %v281_v13 }
  0x78   : > { %v212_v20 = vsub.f32 %v832_v0, %v210_v18  ;;  %v214_v21 = vsub.f32 %v834_v1, %v210_v18 }
  0x79   : > { %v213_v22 = vsub.f32 %v838_v3, %v211_v19  ;;  %v215_v23 = vsub.f32 %v840_v4, %v211_v19 }
  0x7a   : > { %v216_v24 = vmul.f32 %v212_v20, %v212_v20  ;;  %v218_v25 = vmul.f32 %v214_v21, %v214_v21 }
  0x7b   : > { %v217_v26 = vmul.f32 %v213_v22, %v213_v22  ;;  %v219_v27 = vmul.f32 %v215_v23, %v215_v23 }
  0x7c   : > { %v220_v28 = vadd.f32 %v218_v25, %v216_v24 }
  0x7d   : > { %v227_v29 = vadd.f32 %v219_v27, %v217_v26 }
  0x7e   : > { %v221_v30 = vrot.slane %v220_v28, 4 }
  0x7f   : > { %v228_v31 = vrot.slane %v227_v29, 4 }
  0x80   : > { %v222_v32 = vadd.f32 %v221_v30, %v220_v28 }
  0x81   : > { %v229_v33 = vadd.f32 %v228_v31, %v227_v29 }
  0x82   : > { %v223_v34 = vrot.slane %v222_v32, 2 }
  0x83   : > { %v230_v35 = vrot.slane %v229_v33, 2 }
  0x84   : > { %v224_v36 = vadd.f32 %v223_v34, %v222_v32 }
  0x85   : > { %v231_v37 = vadd.f32 %v230_v35, %v229_v33 }
  0x86   : > { %v225_v38 = vrot.slane %v224_v36, 1 }
  0x87   : > { %v232_v39 = vrot.slane %v231_v37, 1 }
  0x88   : > { %v226_v40 = vadd.f32 %v225_v38, %v224_v36 }
  0x89   : > { %v233_v41 = vadd.f32 %v232_v39, %v231_v37 }
  0x8a   : > { %v234_v42 = vmul.f32 0.0625, %v226_v40 }
  0x8b   : > { %v235_v43 = vmul.f32 0.0625, %v233_v41 }
  0x8c   : > { %v236_v44 = vadd.f32 1e-09, %v234_v42 }
  0x8d   : > { %v237_v45 = vadd.f32 1e-09, %v235_v43 }
  0x8e   : > { %504 = vrsqrt.f32 %v236_v44 }
  0x8f   : > { %506 = vrsqrt.f32 %v237_v45 }
  0x98   : > { %v505_v46 = vpop.eup %504 }
  0x99   : > { %v507_v47 = vpop.eup %506  ;;  %v240_v48 = vmul.f32 %v505_v46, %v212_v20  ;;  %v242_v49 = vmul.f32 %v505_v46, %v214_v21  ;;  %v297_v20 = vrot.slane %v272_v8, %v281_v13 }
  0x9a   : > { %v241_v50 = vmul.f32 %v507_v47, %v213_v22  ;;  %v243_v51 = vmul.f32 %v507_v47, %v215_v23 }
  0x9b   : > { %v244_v52 = vsub.f32 0.0, %v240_v48  ;;  %v246_v53 = vsub.f32 0.0, %v242_v49 }
  0x9c   : > { %v245_v54 = vsub.f32 0.0, %v241_v50  ;;  %v247_v55 = vsub.f32 0.0, %v243_v51 }
  0x9d   : > { %v248_v56 = vmul.f32 1.442695, %v244_v52  ;;  %v252_v57 = vmul.f32 1.442695, %v246_v53 }
  0x9e   : > { %v250_v58 = vmul.f32 1.442695, %v245_v54  ;;  %v254_v59 = vmul.f32 1.442695, %v247_v55 }
  0x9f   : > { %508 = vpow2.f32 %v248_v56 }
  0xa0   : > { %510 = vpow2.f32 %v252_v57 }
  0xa1   : > { %512 = vpow2.f32 %v250_v58 }
  0xa2   : > { %514 = vpow2.f32 %v254_v59 }
  0xa9   : > { %v509_v61 = vpop.eup %508 }
  0xaa   : > { %v511_v62 = vpop.eup %510  ;;  %v256_v63 = vadd.f32 1.0, %v509_v61 }
  0xab   : > { %v513_v2 = vpop.eup %512  ;;  %v258_v5 = vadd.f32 1.0, %v511_v62 }
  0xac   : > { %v515_v7 = vpop.eup %514  ;;  %516 = vrcp.f32 %v256_v63  ;;  %v257_v9 = vadd.f32 1.0, %v513_v2 }
  0xad   : > { %v259_v10 = vadd.f32 1.0, %v515_v7  ;;  %518 = vrcp.f32 %v258_v5 }
  0xae   : > { %520 = vrcp.f32 %v257_v9 }
  0xaf   : > { %522 = vrcp.f32 %v259_v10 }
  0xb6   : > { %v517_v17 = vpop.eup %516 }
  0xb7   : > { %v519_v18 = vpop.eup %518  ;;  %v285_v19 = vmul.f32 %v517_v17, %v278_v14 }
  0xb8   : > { %v521_v21 = vpop.eup %520  ;;  %v287_v22 = vmul.f32 %v519_v18, %v278_v14 }
  0xb9   : > { %v523_v23 = vpop.eup %522  ;;  %v300_v24 = vadd.f32 %v293_v15, %v285_v19  ;;  %v286_v25 = vmul.f32 %v521_v21, %v282_v16 }
  0xba   : > { %v302_v26 = vadd.f32 %v293_v15, %v287_v22  ;;  %v288_v27 = vmul.f32 %v523_v23, %v282_v16  ;;  %319 = sbr.rel (!%p943_p9) target bundleno = 221 (0xdd), region = 40 }
  0xbb   : > { %v304_v28 = vmul.f32 %v300_v24, %v832_v0  ;;  %v301_v29 = vadd.f32 %v297_v20, %v286_v25 }
  0xbc   : > { %v306_v30 = vmul.f32 %v302_v26, %v834_v1  ;;  %v303_v31 = vadd.f32 %v297_v20, %v288_v27 }
  0xbd   : > { %308 = vst [vmem:[%s181_s26] sm:$0xff] %v304_v28  ;;  %v305_v32 = vmul.f32 %v301_v29, %v838_v3 }
  0xbe   : > { %310 = vst [vmem:[%s181_s26 + $0x10] sm:$0xff] %v306_v30  ;;  %v307_v33 = vmul.f32 %v303_v31, %v840_v4 }
  0xbf   : > { %309 = vst [vmem:[%s181_s26 + $0x8] sm:$0xff] %v305_v32 }
  0xc0   : > { %311 = vst [vmem:[%s181_s26 + $0x18] sm:$0xff] %v307_v33 }
  0xc1   : > { %s952_s4 = smov (!%p322_p10, %s321_s4), 2 }
  0xc2   : > { %s864_s5 = sshll.u32 %s952_s4, 8 }
  0xc3   : > { %s326_s17 = ssub.s32 512, %s864_s5 }
  0xc4   : > { %327 = vsyncadd %s313_s27, %s326_s17  ;;  %p437_p1 = scmp.ne.s32.totalorder %s864_s5, 0  ;;  %s875_s28 = scalar_lea.hbm %s928_s2, %s433_s20 }
  0xc5   : > { %s439_s19 = sshll.u32 %s952_s4, 3  ;;  %s333_s29 = sshll.u32 %s181_s26, 4  ;;  %s878_s29 = int_to_ptr.vmem [resolvable:$true] %s333_s29 }
  0xc6   : > { %s580_s30 = scalar_lea.vmem %s878_s29, %s864_s5  ;;  %s656_s6 = smov [#allocation7]  }
  0xc7   : > { %p581_p7 = scmp.ne.s32.totalorder %s878_s29, %s580_s30  ;;  %s584_s8 = sshll.u32 %s656_s6, 4  ;;  %s585_s8 = int_to_ptr.vmem [resolvable:$false] %s584_s8 }
  0xc8   : > { %s586_s13 = scalar_lea.vmem %s585_s8, 1024  ;;  %p587_p11 = scmp.lt.s32.totalorder %s878_s29, %s585_s8 }
  0xc9   : > { %p582_p4 = pnand %p581_p7, %p437_p1  ;;  %p588_p13 = scmp.lt.s32.totalorder %s586_s13, %s580_s30 }
  0xcb   : > { %p583_p6 = pneg %p582_p4  ;;  %p589_p2 = por %p588_p13, %p587_p11 }
  0xcd   : > { %p590_p12 = pnand %p589_p2, %p583_p6 }
  0xcf   : > { %593 = shalt.err (!%p590_p12)
}
  0xd0   : > { %s594_s14 = scalar_lea.hbm %s875_s28, %s864_s5  ;;  %s598_s23 = scalar_lea.hbm %s928_s2, 768 }
  0xd1   : > { %p595_p3 = scmp.ne.s32.totalorder %s875_s28, %s594_s14  ;;  %p599_p9 = scmp.lt.u32.totalorder %s875_s28, %s928_s2 }
  0xd2   : > { %p600_p10 = scmp.lt.u32.totalorder %s598_s23, %s594_s14  ;;  %p602_p4 = scmp.lt.u32.totalorder %s594_s14, %s875_s28 }
  0xd3   : > { %p596_p5 = pnand %p595_p3, %p437_p1 }
  0xd4   : > { %p601_p7 = por %p600_p10, %p599_p9 }
  0xd5   : > { %p597_p8 = pneg %p596_p5 }
  0xd6   : > { %p603_p6 = por %p602_p4, %p601_p7 }
  0xd8   : > { %p604_p11 = pnand %p603_p6, %p597_p8 }
  0xda   : > { %607 = shalt.err (!%p604_p11)
}
  0xdb   : > { %s657_s3 = smov 256   ;;  %s658_s17 = smov 384  }
  0xdc   : > { %339 = dma.vmem_to_hbm [thread:$0]  (%p437_p1), %s878_s29, %s864_s5, %s875_s28, %s313_s27, %s657_s3, %s658_s17, %s439_s19  }
  0xdd PF: > { %s348_s21 = sand.u32 1, %s638_s9   ;;  %p944_p13 = scmp.ne.s32.totalorder %s935_s22, 0 }
  0xde   : > { %s349_s25 = scalar_lea.sflag [#allocation4], %s348_s21 }
  0xdf   : > { %p461_p2 = pnand %p420_p0, %p944_p13 }
  0xe1   : > { %633 = dma.done.wait (!%p461_p2), %s349_s25, 512  }
  0xe2   : > { %635 = vsyncadd (!%p461_p2), %s349_s25, 4294966784  ;;  %p16_p12 = scmp.ge.s32.totalorder %s699_s15, 4   ;;  %s945_s9 = smov %s642_s10 }
  0xe3   : > { %s946_s10 = smov %s646_s11  ;;  %s947_s11 = smov %s711_s18 }
  0xe4   : > { %s948_s12 = smov %s699_s15  ;;  %18 = sbr.rel (!%p16_p12) target bundleno = 6 (0x6), region = 78 }
  0xeb   :  { %354 = vsyncpa [#allocation3], 1 }
  0xec   :  { %356 = vsyncpa [#allocation3 + $0x1], 1 }
  0xed   :  { %357 = vsyncpa [#allocation6], 1 }
  0xee   :  { %358 = vsyncpa [#allocation4], 1 }
  0xef   :  { %360 = vsyncpa [#allocation4 + $0x1], 1 }

</bundles_post_ra>
